<compile_context>
chip_gen: v7x
topology: tpu7x:2x2x1
jax: 0.10.0
libtpu: 0.0.40
codegen_flags: <defaults>
</compile_context>

<pallas_src>
import functools
import math

import jax
import jax.numpy as jnp
from jax import lax
from jax.experimental import pallas as pl
from jax.experimental.pallas import tpu as pltpu

_MASK_VALUE = jnp.finfo(jnp.float32).min  # large finite negative (safer than -inf)


def _round_up(x: int, m: int) -> int:
    return (x + m - 1) // m * m


def _head_kernel(x_ref, w_ref, b_ref, o_ref, *, batch, seq, head_size, hp,
                 compute_dtype):
    # x_ref: (B*T, C) compute_dtype | w_ref: (C, 3*hp) compute_dtype
    # b_ref: (1, 3*hp) f32          | o_ref: (B*T, hp) f32  (lane-dense, hp>=128)
    x = x_ref[...]
    w = w_ref[...]

    # Fused Q|K|V projection: single MXU push, fp32 accumulation, f32 bias add.
    qkv = jnp.dot(x, w, preferred_element_type=jnp.float32) + b_ref[...]

    # Lane-aligned static slices (each slot is hp = multiple of 128 wide).
    q = qkv[:, 0 * hp:1 * hp].reshape(batch, seq, hp).astype(compute_dtype)
    k = qkv[:, 1 * hp:2 * hp].reshape(batch, seq, hp).astype(compute_dtype)
    v = qkv[:, 2 * hp:3 * hp].reshape(batch, seq, hp).astype(compute_dtype)

    # Batched q @ k^T: contract last axes of both -> no materialized transpose.
    att = lax.dot_general(q, k, (((2,), (2,)), ((0,), (0,))),
                          preferred_element_type=jnp.float32)       # (B, T, T)
    # Reference multiplies (not divides) by sqrt(head_size) -- reproduced.
    att = att * (head_size ** 0.5)

    # Causal mask generated in-kernel (no tril input, no float equality).
    rows = lax.broadcasted_iota(jnp.int32, (seq, seq), 0)
    cols = lax.broadcasted_iota(jnp.int32, (seq, seq), 1)
    att = jnp.where((rows >= cols)[None, :, :], att, _MASK_VALUE)

    # Softmax in f32; denominator reciprocal on the EUP (approx=True).
    m = jnp.max(att, axis=-1, keepdims=True)
    e = jnp.exp(att - m)
    p = e * pl.reciprocal(jnp.sum(e, axis=-1, keepdims=True), approx=True)

    # Dropout: identity at inference.
    out = lax.dot_general(p.astype(compute_dtype), v, (((2,), (1,)), ((0,), (0,))),
                          preferred_element_type=jnp.float32)       # (B, T, hp)
    o_ref[...] = out.reshape(batch * seq, hp).astype(o_ref.dtype)


@functools.partial(jax.jit, static_argnames=("compute_dtype",))
def head_forward(x, wq, bq, wk, bk, wv, bv, *, compute_dtype=jnp.float32):
    """x: (B, T, C) f32.  w*: (C, hs).  b*: (1, hs).  Returns (B, T, hs) f32."""
    B, T, C = x.shape
    hs = wq.shape[1]
    hp = max(128, _round_up(hs, 128))  # lane-dense padded head width

    def pad_w(w):
        return jnp.pad(w, ((0, 0), (0, hp - hs)))

    def pad_b(b):
        return jnp.pad(b, ((0, 0), (0, hp - hs)))

    # Fuse (and zero-pad) the three projections into one weight / bias.
    w_fused = jnp.concatenate([pad_w(wq), pad_w(wk), pad_w(wv)], axis=1)  # (C, 3*hp)
    b_fused = jnp.concatenate([pad_b(bq), pad_b(bk), pad_b(bv)], axis=1)  # (1, 3*hp)
    b_fused = b_fused.astype(jnp.float32)

    # Operand dtype for the MXU (bf16 on v5e/v6e/v7x for full rate); bias and
    # accumulation stay fp32.
    x2 = x.reshape(B * T, C).astype(compute_dtype)
    w_fused = w_fused.astype(compute_dtype)

    kernel = functools.partial(
        _head_kernel, batch=B, seq=T, head_size=hs, hp=hp,
        compute_dtype=compute_dtype)

    grid_spec = pltpu.PrefetchScalarGridSpec(
        num_scalar_prefetch=0,
        grid=(1,),  # whole problem in one step (overhead-bound at these sizes)
        in_specs=[
            pl.BlockSpec((B * T, C), lambda i: (0, 0)),       # x (flattened)
            pl.BlockSpec((C, 3 * hp), lambda i: (0, 0)),      # fused W
            pl.BlockSpec((1, 3 * hp), lambda i: (0, 0)),      # fused bias
        ],
        out_specs=pl.BlockSpec((B * T, hp), lambda i: (0, 0)),
    )

    out_padded = pl.pallas_call(
        kernel,
        out_shape=jax.ShapeDtypeStruct((B * T, hp), jnp.float32),
        grid_spec=grid_spec,
        compiler_params=pltpu.CompilerParams(
            dimension_semantics=("arbitrary",)),
    )(x2, w_fused, b_fused)

    # Slice the real head width back out (lane-dense slab -> (B, T, hs)).
    return out_padded[:, :hs].reshape(B, T, hs)


def head_reference(x, wq, bq, wk, bk, wv, bv, *, compute_dtype=jnp.float32):
    """Pure-JAX reference mirroring the PyTorch forward (and the kernel's
    operand-dtype casts) for numerical comparison."""
    cd = compute_dtype
    xc = x.astype(cd)

    def proj(w, b):
        return jnp.dot(xc, w.astype(cd), preferred_element_type=jnp.float32) + b

    q = proj(wq, bq)
    k = proj(wk, bk)
    v = proj(wv, bv)
    hs = wq.shape[1]
    att = jnp.einsum("btd,bsd->bts", q.astype(cd), k.astype(cd),
                     preferred_element_type=jnp.float32) * (hs ** 0.5)
    T = x.shape[1]
    tril = jnp.tril(jnp.ones((T, T), dtype=jnp.float32))
    att = jnp.where(tril[None] == 0.0, -jnp.inf, att)
    p = jax.nn.softmax(att, axis=-1)
    return jnp.einsum("bts,bsd->btd", p.astype(cd), v.astype(cd),
                      preferred_element_type=jnp.float32)


if __name__ == "__main__":
    # Small shapes consistent with the module: B=2, T=block_size=8,
    # C=n_embd=32, head_size=16.
    B, T, C, HS = 2, 8, 32, 16

    key = jax.random.PRNGKey(0)
    kx, kq, kbq, kk, kbk, kv, kbv = jax.random.split(key, 7)

    x = jax.random.normal(kx, (B, T, C), dtype=jnp.float32)

    # Deterministic parameter init (Linear-like scale 1/sqrt(C)).
    scale = 1.0 / math.sqrt(C)
    wq = jax.random.uniform(kq, (C, HS), jnp.float32, -scale, scale)
    bq = jax.random.uniform(kbq, (1, HS), jnp.float32, -scale, scale)
    wk = jax.random.uniform(kk, (C, HS), jnp.float32, -scale, scale)
    bk = jax.random.uniform(kbk, (1, HS), jnp.float32, -scale, scale)
    wv = jax.random.uniform(kv, (C, HS), jnp.float32, -scale, scale)
    bv = jax.random.uniform(kbv, (1, HS), jnp.float32, -scale, scale)

    # fp32 operand path (exact module semantics).
    out_f32 = head_forward(x, wq, bq, wk, bk, wv, bv,
                           compute_dtype=jnp.float32)
    out_f32 = jax.block_until_ready(out_f32)
    ref_f32 = head_reference(x, wq, bq, wk, bk, wv, bv,
                             compute_dtype=jnp.float32)
    assert out_f32.shape == (B, T, HS)
    assert bool(jnp.allclose(out_f32, ref_f32, atol=2e-3, rtol=2e-3)), (
        "fp32 mismatch: max abs diff "
        f"{float(jnp.max(jnp.abs(out_f32 - ref_f32)))}")

    # bf16 operand / fp32 accumulate path (MXU fast path on v5e/v6e/v7x).
    out_bf16 = head_forward(x, wq, bq, wk, bk, wv, bv,
                            compute_dtype=jnp.bfloat16)
    out_bf16 = jax.block_until_ready(out_bf16)
    ref_bf16 = head_reference(x, wq, bq, wk, bk, wv, bv,
                              compute_dtype=jnp.bfloat16)
    assert out_bf16.shape == (B, T, HS)
    assert bool(jnp.allclose(out_bf16, ref_bf16, atol=2e-2, rtol=2e-2)), (
        "bf16 mismatch: max abs diff "
        f"{float(jnp.max(jnp.abs(out_bf16 - ref_bf16)))}")

    print("KERNEL_OK")
</pallas_src>

<mosaic_0001>
module attributes {stable_mosaic.version = 11 : i64} {
  func.func @_head_kernel(%arg0: i32, %arg1: memref<16x32xf32, #tpu.memory_space<vmem>>, %arg2: memref<32x384xf32, #tpu.memory_space<vmem>>, %arg3: memref<1x384xf32, #tpu.memory_space<vmem>>, %arg4: memref<16x128xf32, #tpu.memory_space<vmem>>) attributes {dimension_semantics = [#tpu.dimension_semantics<arbitrary>], iteration_bounds = array<i64: 1>, scalar_prefetch = 0 : i64, scratch_operands = 0 : i64, tpu.core_type = #tpu.core_type<tc>, window_params = [{pipeline_mode = #tpu.pipeline_mode<synchronous>, transform_indices = @transform_0, window_bounds = array<i64: 16, 32>}, {pipeline_mode = #tpu.pipeline_mode<synchronous>, transform_indices = @transform_1, window_bounds = array<i64: 32, 384>}, {pipeline_mode = #tpu.pipeline_mode<synchronous>, transform_indices = @transform_2, window_bounds = array<i64: 1, 384>}, {pipeline_mode = #tpu.pipeline_mode<synchronous>, transform_indices = @transform_3, window_bounds = array<i64: 16, 128>}]} {
    %c0 = arith.constant 0 : index
    %c0_0 = arith.constant 0 : index
    %0 = vector.load %arg1[%c0, %c0_0] : memref<16x32xf32, #tpu.memory_space<vmem>>, vector<16x32xf32>
    %c0_1 = arith.constant 0 : index
    %c0_2 = arith.constant 0 : index
    %1 = vector.load %arg2[%c0_1, %c0_2] : memref<32x384xf32, #tpu.memory_space<vmem>>, vector<32x384xf32>
    %cst = arith.constant dense<0.000000e+00> : vector<16x384xf32>
    %2 = tpu.matmul %0, %1, %cst {dimension_numbers = #tpu.dot_dimension_numbers<[1], [0], [0], [1], [0, 0, 1, 1], [], []>} : vector<16x32xf32>, vector<32x384xf32>, vector<16x384xf32> -> vector<16x384xf32>
    %c0_3 = arith.constant 0 : index
    %c0_4 = arith.constant 0 : index
    %3 = vector.load %arg3[%c0_3, %c0_4] : memref<1x384xf32, #tpu.memory_space<vmem>>, vector<1x384xf32>
    %4 = vector.broadcast %3 : vector<1x384xf32> to vector<16x384xf32>
    %5 = arith.addf %2, %4 : vector<16x384xf32>
    %6 = vector.extract_strided_slice %5 {offsets = [0, 0], sizes = [16, 128], strides = [1, 1]} : vector<16x384xf32> to vector<16x128xf32>
    %7 = vector.shape_cast %6 : vector<16x128xf32> to vector<2x8x128xf32>
    %8 = vector.extract_strided_slice %5 {offsets = [0, 128], sizes = [16, 128], strides = [1, 1]} : vector<16x384xf32> to vector<16x128xf32>
    %9 = vector.shape_cast %8 : vector<16x128xf32> to vector<2x8x128xf32>
    %10 = vector.extract_strided_slice %5 {offsets = [0, 256], sizes = [16, 128], strides = [1, 1]} : vector<16x384xf32> to vector<16x128xf32>
    %11 = vector.shape_cast %10 : vector<16x128xf32> to vector<2x8x128xf32>
    %cst_5 = arith.constant dense<0.000000e+00> : vector<2x8x8xf32>
    %12 = tpu.matmul %7, %9, %cst_5 {dimension_numbers = #tpu.dot_dimension_numbers<[2], [2], [1], [1], [0, 0, 0, 1, 1, 1], [0], [0]>} : vector<2x8x128xf32>, vector<2x8x128xf32>, vector<2x8x8xf32> -> vector<2x8x8xf32>
    %cst_6 = arith.constant 4.000000e+00 : f32
    %13 = vector.broadcast %cst_6 : f32 to vector<2x8x8xf32>
    %14 = arith.mulf %12, %13 : vector<2x8x8xf32>
    %15 = tpu.iota {dimensions = array<i32: 0>} : vector<8x8xi32>
    %16 = tpu.iota {dimensions = array<i32: 1>} : vector<8x8xi32>
    %17 = arith.cmpi sge, %15, %16 : vector<8x8xi32>
    %18 = vector.shape_cast %17 : vector<8x8xi1> to vector<1x8x8xi1>
    %cst_7 = arith.constant -3.40282347E+38 : f32
    %19 = vector.shape_cast %18 : vector<1x8x8xi1> to vector<1x8x8xi1>
    %20 = vector.broadcast %19 : vector<1x8x8xi1> to vector<2x8x8xi1>
    %21 = vector.broadcast %cst_7 : f32 to vector<2x8x8xf32>
    %22 = arith.select %20, %14, %21 : vector<2x8x8xi1>, vector<2x8x8xf32>
    %cst_8 = arith.constant dense<0xFF800000> : vector<2x8xf32>
    %23 = vector.multi_reduction <maximumf>, %22, %cst_8 [2] : vector<2x8x8xf32> to vector<2x8xf32>
    %24 = vector.shape_cast %23 : vector<2x8xf32> to vector<2x8x1xf32>
    %25 = vector.broadcast %24 : vector<2x8x1xf32> to vector<2x8x8xf32>
    %26 = arith.subf %22, %25 : vector<2x8x8xf32>
    %27 = math.exp %26 : vector<2x8x8xf32>
    %cst_9 = arith.constant dense<0.000000e+00> : vector<2x8xf32>
    %28 = vector.multi_reduction <add>, %27, %cst_9 [2] : vector<2x8x8xf32> to vector<2x8xf32>
    %29 = vector.shape_cast %28 : vector<2x8xf32> to vector<2x8x1xf32>
    %30 = tpu.reciprocal %29 {approx = true} : vector<2x8x1xf32> -> vector<2x8x1xf32>
    %31 = vector.broadcast %30 : vector<2x8x1xf32> to vector<2x8x8xf32>
    %32 = arith.mulf %27, %31 : vector<2x8x8xf32>
    %cst_10 = arith.constant dense<0.000000e+00> : vector<2x8x128xf32>
    %33 = tpu.matmul %32, %11, %cst_10 {dimension_numbers = #tpu.dot_dimension_numbers<[2], [1], [1], [2], [0, 0, 0, 1, 1, 2], [0], [0]>} : vector<2x8x8xf32>, vector<2x8x128xf32>, vector<2x8x128xf32> -> vector<2x8x128xf32>
    %34 = vector.shape_cast %33 : vector<2x8x128xf32> to vector<16x128xf32>
    %c0_11 = arith.constant 0 : index
    %c0_12 = arith.constant 0 : index
    %35 = vector.load %arg4[%c0_11, %c0_12] : memref<16x128xf32, #tpu.memory_space<vmem>>, vector<16x128xf32>
    tpu.vector_store %arg4[%c0_11, %c0_12], %34 {strides = array<i32>} : memref<16x128xf32, #tpu.memory_space<vmem>>, vector<16x128xf32>,
    return
  }
  func.func @transform_0(%arg0: i32) -> (i32, i32) {
    %c0_i32 = arith.constant 0 : i32
    %c0_i32_0 = arith.constant 0 : i32
    %c0_i32_1 = arith.constant 0 : i32
    return %c0_i32, %c0_i32_0 : i32, i32
  }
  func.func @transform_1(%arg0: i32) -> (i32, i32) {
    %c0_i32 = arith.constant 0 : i32
    %c0_i32_0 = arith.constant 0 : i32
    %c0_i32_1 = arith.constant 0 : i32
    return %c0_i32, %c0_i32_0 : i32, i32
  }
  func.func @transform_2(%arg0: i32) -> (i32, i32) {
    %c0_i32 = arith.constant 0 : i32
    %c0_i32_0 = arith.constant 0 : i32
    %c0_i32_1 = arith.constant 0 : i32
    return %c0_i32, %c0_i32_0 : i32, i32
  }
  func.func @transform_3(%arg0: i32) -> (i32, i32) {
    %c0_i32 = arith.constant 0 : i32
    %c0_i32_0 = arith.constant 0 : i32
    %c0_i32_1 = arith.constant 0 : i32
    return %c0_i32, %c0_i32_0 : i32, i32
  }
}

</mosaic_0001>

<bundles_post_ra>
// kernel: head_forward.1
= control target key start
LH: loop header
LB: loop body
LE: loop exit
PB: predicated region body
PF: predicated region fallthrough
CT: control target
= control target key end

     0   :  { %v607_v3 = vmov 0.0   ;;  %vm45_vm0 = vcmask 261120   ;;  %vm608_vm1 = vmmov 0   ;;  %v30_v21 = vlaneseq  ;;  %s704_s1 = inlined_call_operand.vmem [shape: f32[32,384], index: 1, kind: input, shape index: {}]   ;;  %s705_s0 = inlined_call_operand.vmem [shape: f32[16,32], index: 0, kind: input, shape index: {}]   ;;  %s706_s2 = inlined_call_operand.vmem [shape: f32[1,384], index: 2, kind: input, shape index: {}]   ;;  %s707_s3 = inlined_call_operand.vmem [shape: f32[16,128], index: 3, kind: output, shape index: {}]  }
   0x1   :  { %v17_v0 = vld [vmem:[%s704_s1 + $0x8] sm:$0xff]  ;;  %v20_v1 = vld [vmem:[%s704_s1 + $0x20] sm:$0xff]  ;;  %116 = vmatprep.mubr.f32.mxu0 %v607_v3  ;;  %v19_v5 = vld [vmem:[%s704_s1 + $0x18] sm:$0xff]  ;;  %vm355_vm3 = vcmask 64512  }
   0x2   :  { %v16_v2 = vld [vmem:[%s704_s1] sm:$0xff]  ;;  %v581_v4 = vpack.c.bf16 %v20_v1, %v17_v0  ;;  %v23_v6 = vld [vmem:[%s704_s1 + $0x38] sm:$0xff]  ;;  %v26_v7 = vld [vmem:[%s704_s1 + $0x50] sm:$0xff]  ;;  %v31_v22 = vshrl.u32 %v30_v21, 7  ;;  %v349_v42 = vand.u32 127, %v30_v21 }
   0x3   :  { %v583_v8 = vpack.c.bf16 %v19_v5, %v16_v2  ;;  %v585_v9 = vpack.c.bf16 %v26_v7, %v23_v6  ;;  %v22_v10 = vld [vmem:[%s704_s1 + $0x30] sm:$0xff]  ;;  %v25_v11 = vld [vmem:[%s704_s1 + $0x48] sm:$0xff]  ;;  %v14_v12 = vld [vmem:[%s705_s0] sm:$0xff] }
   0x4   :  { %582 = vmatprep.subr.bf16.mxu0 %v581_v4  ;;  %v18_v13 = vld [vmem:[%s704_s1 + $0x10] sm:$0xff]  ;;  %v21_v14 = vld [vmem:[%s704_s1 + $0x28] sm:$0xff]  ;;  %558 = vmatprep.mubr.msk.f32.mxu1 %vm45_vm0, %v14_v12  ;;  %v587_v15 = vpack.c.bf16 %v25_v11, %v22_v10  ;;  %v24_v17 = vld [vmem:[%s704_s1 + $0x40] sm:$0xff]  ;;  %v36_v23 = vsub.s32 1, %v31_v22  ;;  %v32_v25 = vsub.s32 0, %v31_v22  ;;  %v40_v26 = vsub.s32 2, %v31_v22 }
   0x5   :  { %584 = vmatpush1.bf16.msra.mxu0 %v583_v8  ;;  %v589_v16 = vpack.c.bf16 %v21_v14, %v18_v13  ;;  %v27_v18 = vld [vmem:[%s704_s1 + $0x58] sm:$0xff]  ;;  %v15_v20 = vld [vmem:[%s705_s0 + $0x8] sm:$0xff]  ;;  %v28_v24 = vld [vmem:[%s706_s2] sm:$0x7]  ;;  %vm350_vm2 = vcmp.ge.s32.totalorder %v31_v22, %v349_v42 }
   0x6   :  { %586 = vmatprep.subr.bf16.mxu0 %v585_v9  ;;  %v593_v19 = vpack.c.bf16 %v27_v18, %v24_v17  ;;  %v37_v27 = vrot.slane %v28_v24, %v36_v23  ;;  %v33_v29 = vrot.slane %v28_v24, %v32_v25  ;;  %v41_v31 = vrot.slane %v28_v24, %v40_v26 }
   0x7   :  { %590 = vmatprep.subr.bf16.mxu1 %v589_v16 }
   0x8   :  { %592 = vmatpush3.bf16.msra.mxu1 %v589_v16 }
   0x9   :  { %588 = vmatpush1.bf16.msra.mxu0 %v587_v15  ;;  %594 = vmatprep.subr.bf16.mxu1 %v593_v19 }
   0xa   :  { %566 = vmatprep.subr.mxu0 %v607_v3 }
   0xc   :  { %530 = vmatmul.mubr.msk.f32.vlgmr.msra.gmra.mrb[0].mxu0 %vm45_vm0, %v14_v12  ;;  %596 = vmatpush3.bf16.msra.mxu1 %v593_v19 }
   0xd   :  { %122 = vmatprep.mubr.f32.mxu0 %v607_v3  ;;  %561 = vmatprep.subr.mxu1 %v607_v3 }
   0xf   :  { %559 = vmatmul.mubr.msk.f32.vlgmr.msra.gmra.mrb[0].mxu1 %vm45_vm0, %v15_v20 }
  0x10   :  { %531 = vmatmul.mubr.msk.f32.gmra.mrb[2].mxu0 %vm45_vm0, %v15_v20  ;;  %563 = vmatprep.mubr.msk.f32.mxu1 %vm608_vm1, %v607_v3 }
  0x11   :  { %568 = vmatprep.mubr.msk.f32.mxu0 %vm608_vm1, %v607_v3 }
  0xdf   :  { %v118_v28 = vpop.f32.mrb[0].mxu0 }
  0xe0   :  { %v120_v30 = vpop.f32.mrb[1].mxu0  ;;  %v119_v36 = vadd.f32 %v118_v28, %v33_v29 }
  0xe1   :  { %v121_v32 = vadd.f32 %v120_v30, %v37_v27 }
  0xe2   :  { %v560_v33 = vpop.f32.mrb[0].mxu1 }
  0xe3   :  { %v124_v34 = vpop.f32.mrb[2].mxu0  ;;  %562 = vmatpush3.xpose.msra.mxu1 %v121_v32  ;;  %v195_v35 = vpop.f32.mrb[1].mxu1  ;;  %v201_v40 = vadd.f32 %v560_v33, %v41_v31 }
  0xe4   :  { %v126_v37 = vpop.f32.mrb[3].mxu0  ;;  %v196_v38 = vadd.f32 %v195_v35, %v41_v31  ;;  %571 = vmatprep.subr.mxu1 %v607_v3  ;;  %v125_v41 = vadd.f32 %v124_v34, %v33_v29 }
  0xe5   :  { %v127_v39 = vadd.f32 %v126_v37, %v37_v27 }
  0xe6   :  { %564 = vmatmul.mubr.f32.vlgmr.msra.gmra.mrb[2].mxu1 %v119_v36 }
  0xe7   :  { %567 = vmatpush3.xpose.msra.mxu0 %v127_v39  ;;  %572 = vmatpush3.msra.mxu1 %v196_v38 }
  0xe8   :  { %576 = vmatprep.subr.mxu0 %v607_v3  ;;  %573 = vmatprep.mubr.msk.f32.mxu1 %vm608_vm1, %v607_v3 }
  0xea   :  { %569 = vmatmul.mubr.f32.vlgmr.msra.gmra.mrb[4].mxu0 %v125_v41 }
  0xeb   :  { %577 = vmatpush3.msra.mxu0 %v201_v40  ;;  %578 = vmatprep.mubr.msk.f32.mxu0 %vm608_vm1, %v607_v3 }
 0x1b9   :  { %v270_v43 = vpop.f32.mrb[2].mxu1 }
 0x1ba   :  { %v344_v44 = vmul.f32 4.0, %v270_v43  ;;  %v565_v45 = vpop.f32.mrb[3].mxu1 }
 0x1bc   :  { %v353_v46 = vsel %vm350_vm2, %v344_v44, -3.4028235e+38 }
 0x1bd   :  { %v340_v47 = vpop.f32.mrb[4].mxu0  ;;  %v356_v48 = vsel %vm355_vm3, %v353_v46, -inf }
 0x1be   :  { %v345_v49 = vmul.f32 4.0, %v340_v47  ;;  %v570_v50 = vpop.f32.mrb[5].mxu0  ;;  %357 = vmax.xlane.f32.xlu0 %v356_v48 }
 0x1c0   :  { %v354_v51 = vsel %vm350_vm2, %v345_v49, -3.4028235e+38 }
 0x1c1   :  { %v359_v52 = vsel %vm355_vm3, %v354_v51, -inf }
 0x1c2   :  { %360 = vmax.xlane.f32.xlu0 %v359_v52 }
 0x24b   :  { %v358_v53 = vpop.xlane.xlu0 %357 }
 0x24c   :  { %v362_v54 = vsub.f32 %v353_v46, %v358_v53 }
 0x24e   :  { %v364_v55 = vmul.f32 1.442695, %v362_v54 }
 0x24f   :  { %v361_v56 = vpop.xlane.xlu0 %360 }
 0x250   :  { %599 = vpow2.f32 %v364_v55  ;;  %v363_v57 = vsub.f32 %v354_v51, %v361_v56 }
 0x252   :  { %v366_v58 = vmul.f32 1.442695, %v363_v57 }
 0x254   :  { %601 = vpow2.f32 %v366_v58 }
 0x25a   :  { %v600_v59 = vpop.eup %599 }
 0x25b   :  { %v368_v60 = vsel %vm355_vm3, %v600_v59, 0.0 }
 0x25c   :  { %369 = vadd.xlane.f32.xlu1 %v368_v60 }
 0x25e   :  { %v602_v61 = vpop.eup %601 }
 0x25f   :  { %v371_v62 = vsel %vm355_vm3, %v602_v61, 0.0 }
 0x260   :  { %372 = vadd.xlane.f32.xlu1 %v371_v62 }
 0x2e9   :  { %v370_v63 = vpop.xlane.xlu1 %369 }
 0x2ea   :  { %603 = vrcp.f32 %v370_v63 }
 0x2ed   :  { %v373_v0 = vpop.xlane.xlu1 %372 }
 0x2ee   :  { %605 = vrcp.f32 %v373_v0 }
 0x2f4   :  { %v604_v1 = vpop.eup %603 }
 0x2f5   :  { %v376_v2 = vmul.f32 %v604_v1, %v600_v59 }
 0x2f7   :  { %574 = vmatmul.mubr.msk.f32.vlgmr.msra.gmra.mrb[4].mxu1 %vm355_vm3, %v376_v2 }
 0x2f8   :  { %v606_v3 = vpop.eup %605 }
 0x2f9   :  { %v377_v4 = vmul.f32 %v606_v3, %v602_v61 }
 0x2fb   :  { %579 = vmatmul.mubr.msk.f32.vlgmr.msra.gmra.mrb[6].mxu0 %vm355_vm3, %v377_v4 }
 0x3ca   :  { %v447_v5 = vpop.f32.mrb[4].mxu1 }
 0x3cb   :  { %524 = vst [vmem:[%s707_s3] sm:$0xff] %v447_v5  ;;  %v575_v6 = vpop.f32.mrb[5].mxu1 }
 0x3ce   :  { %v520_v7 = vpop.f32.mrb[6].mxu0 }
 0x3cf   :  { %525 = vst [vmem:[%s707_s3 + $0x8] sm:$0xff] %v520_v7  ;;  %v580_v8 = vpop.f32.mrb[7].mxu0 }

</bundles_post_ra>
